<compile_context>
chip_gen: v6e
topology: v6e:2x2x1
jax: 0.10.0
libtpu: 0.0.40
codegen_flags: <defaults>
</compile_context>

<pallas_src>
from functools import partial

import numpy as np
import jax
import jax.numpy as jnp
from jax import lax
from jax.experimental import pallas as pl
from jax.experimental.pallas import tpu as pltpu

LANE = 128
SUBLANE = 8
STRIP = 8      # rows per inner strip: one (8,128) f32 vreg per intermediate
UNROLL = 4


# ----------------------------------------------------------------------------
# Parameter construction (plain numpy "glue", mirrors Reconstruct.__init__)
# ----------------------------------------------------------------------------
def _rot(axis, deg):
    th = np.float32(deg) / np.float32(180.0) * np.float32(np.pi)
    c = np.cos(th, dtype=np.float32)
    s = np.sin(th, dtype=np.float32)
    if axis == "x":
        return np.array([[1, 0, 0], [0, c, -s], [0, s, c]], dtype=np.float32)
    if axis == "y":
        return np.array([[c, 0, s], [0, 1, 0], [-s, 0, c]], dtype=np.float32)
    return np.array([[c, -s, 0], [s, c, 0], [0, 0, 1]], dtype=np.float32)


def make_reconstruct_params(alpha, beta, l, D):
    R = _rot("x", beta[1]) @ _rot("y", alpha[1]) @ _rot("y", -alpha[0]) @ _rot("x", -beta[0])
    T1 = np.array([[0.0], [0.0], [l[0]]], dtype=np.float32)
    T2 = np.array([[0.0], [0.0], [l[1]]], dtype=np.float32)
    t = T1 - _rot("x", beta[0]) @ _rot("y", alpha[0]) @ _rot("y", -alpha[1]) @ _rot("x", -beta[1]) @ T2
    R_inv = _rot("y", -alpha[0]) @ _rot("x", -beta[0])
    R_inv1 = _rot("x", beta[0]) @ _rot("y", alpha[0])
    R_inv2 = _rot("x", beta[1]) @ _rot("y", alpha[1])
    return (R.astype(np.float32), t.astype(np.float32), R_inv.astype(np.float32),
            R_inv1.astype(np.float32), R_inv2.astype(np.float32), T1, T2)


def _pack_params(R, t, R_inv, R_inv1, R_inv2, l, D):
    """Flat f32 params vector (lives in SMEM, read scalar by scalar).

    indices: 0-8 R | 9-11 cA=R0.t, cB=R1.t, c2=R2.t | 12 l0 | 13 l1
             14-22 R_inv | 23-31 R_inv1 | 32-40 R_inv2
             41 1/D0 | 42 1/D1 | 43 D0 | 44 D1
    """
    tv = t.reshape(3).astype(np.float32)
    cA = np.float32(R[0] @ tv)
    cB = np.float32(R[1] @ tv)
    c2 = np.float32(R[2] @ tv)
    flat = np.concatenate([
        R.reshape(-1),
        np.array([cA, cB, c2], np.float32),
        np.array([l[0], l[1]], np.float32),
        R_inv.reshape(-1),
        R_inv1.reshape(-1),
        R_inv2.reshape(-1),
        np.array([1.0 / D[0], 1.0 / D[1], D[0], D[1]], np.float32),
    ]).astype(np.float32)
    return jnp.asarray(flat)


# ----------------------------------------------------------------------------
# Pallas kernel: strip-mined per-point pipeline on (8, 128) vregs
# ----------------------------------------------------------------------------
def _reconstruct_kernel(params_ref, pts_ref, out_ref):
    # --- scalar parameters (SMEM) --- hoisted above the strip loop, read once
    R00 = params_ref[0]; R01 = params_ref[1]; R02 = params_ref[2]
    R10 = params_ref[3]; R11 = params_ref[4]; R12 = params_ref[5]
    R20 = params_ref[6]; R21 = params_ref[7]; R22 = params_ref[8]
    cA = params_ref[9]; cB = params_ref[10]; c2 = params_ref[11]
    l0 = params_ref[12]; l1 = params_ref[13]
    Ri = [params_ref[14 + k] for k in range(9)]    # R_inv
    Ra = [params_ref[23 + k] for k in range(9)]    # R_inv1
    Rb = [params_ref[32 + k] for k in range(9)]    # R_inv2
    invD0 = params_ref[41]; invD1 = params_ref[42]
    D0 = params_ref[43]; D1 = params_ref[44]

    n_strips = out_ref.shape[1] // STRIP           # static

    def strip_body(s, carry):
        off = pl.multiple_of(s * STRIP, STRIP)
        rs = pl.ds(off, STRIP)

        # --- per-point data: one vreg per channel ---
        p1x = pts_ref[0, rs, :]; p1y = pts_ref[1, rs, :]
        p2x = pts_ref[2, rs, :]; p2y = pts_ref[3, rs, :]

        ksi1 = p1x * invD0; eta1 = p1y * invD0
        ksi2 = p2x * invD1; eta2 = p2y * invD1

        # rows a, b of the 4x3 system matrix A = [[1,0,-ksi1],[0,1,-eta1],a,b]
        a0 = R00 - R20 * ksi2; a1 = R01 - R21 * ksi2; a2 = R02 - R22 * ksi2
        b0 = R10 - R20 * eta2; b1 = R11 - R21 * eta2; b2 = R12 - R22 * eta2

        # a.t and b.t via host-folded dot products: a.t = R0.t - (R2.t)*ksi2
        at = cA - c2 * ksi2
        bt = cB - c2 * eta2

        # M = A^T A (symmetric 3x3), rhs = A^T B with B = [0, 0, at, bt]^T
        M00 = 1.0 + a0 * a0 + b0 * b0
        M01 = a0 * a1 + b0 * b1
        M02 = -ksi1 + a0 * a2 + b0 * b2
        M11 = 1.0 + a1 * a1 + b1 * b1
        M12 = -eta1 + a1 * a2 + b1 * b2
        M22 = ksi1 * ksi1 + eta1 * eta1 + a2 * a2 + b2 * b2

        r0 = a0 * at + b0 * bt
        r1 = a1 * at + b1 * bt
        r2 = a2 * at + b2 * bt

        # C = M^{-1} rhs via adjugate; scale by 1/det once at the end.
        adj00 = M11 * M22 - M12 * M12
        adj01 = M02 * M12 - M01 * M22
        adj02 = M01 * M12 - M02 * M11
        adj11 = M00 * M22 - M02 * M02
        adj12 = M01 * M02 - M00 * M12
        adj22 = M00 * M11 - M01 * M01

        det = M00 * adj00 + M01 * adj01 + M02 * adj02
        inv_det = pl.reciprocal(det, approx=True)
        inv_det = inv_det * (2.0 - det * inv_det)          # one Newton step

        C0 = (adj00 * r0 + adj01 * r1 + adj02 * r2) * inv_det
        C1 = (adj01 * r0 + adj11 * r1 + adj12 * r2) * inv_det
        C2 = (adj02 * r0 + adj12 * r1 + adj22 * r2) * inv_det

        # temp = R_inv @ (C - T1), T1 = [0, 0, l0]
        v0 = C0; v1 = C1; v2 = C2 - l0
        T0 = Ri[0] * v0 + Ri[1] * v1 + Ri[2] * v2
        T1v = Ri[3] * v0 + Ri[4] * v1 + Ri[5] * v2
        T2v = Ri[6] * v0 + Ri[7] * v1 + Ri[8] * v2

        # temp_inv1 = R_inv1 @ temp + [0,0,l0] ; temp_inv2 = R_inv2 @ temp + [0,0,l1]
        w10 = Ra[0] * T0 + Ra[1] * T1v + Ra[2] * T2v
        w11 = Ra[3] * T0 + Ra[4] * T1v + Ra[5] * T2v
        w12 = Ra[6] * T0 + Ra[7] * T1v + Ra[8] * T2v + l0

        w20 = Rb[0] * T0 + Rb[1] * T1v + Rb[2] * T2v
        w21 = Rb[3] * T0 + Rb[4] * T1v + Rb[5] * T2v
        w22 = Rb[6] * T0 + Rb[7] * T1v + Rb[8] * T2v + l1

        # bare EUP approx reciprocal (error ~2^-12) for the perspective divides
        s1 = pl.reciprocal(w12, approx=True) * D0
        s2 = pl.reciprocal(w22, approx=True) * D1

        # merged output slab: rows 0-1 pred1, 2-3 pred2, 4-6 output (=temp)
        out_ref[0, rs, :] = w10 * s1
        out_ref[1, rs, :] = w11 * s1
        out_ref[2, rs, :] = w20 * s2
        out_ref[3, rs, :] = w21 * s2
        out_ref[4, rs, :] = T0
        out_ref[5, rs, :] = T1v
        out_ref[6, rs, :] = T2v
        return carry

    lax.fori_loop(0, n_strips, strip_body, 0,
                  unroll=max(1, min(UNROLL, n_strips)))


# ----------------------------------------------------------------------------
# Wrapper
# ----------------------------------------------------------------------------
def _choose_tiling(n, max_tile_rows=512):
    """Pick (tile_rows, rows_pad): big tiles, minimal pad waste, even #steps
    when there is enough work so the parallel grid can use both v7x TCs."""
    rows = max(1, -(-n // LANE))                       # ceil(n/128)
    n_steps = max(1, -(-rows // max_tile_rows))
    if rows >= 2 * SUBLANE:                            # enough work to split
        if n_steps < 2:
            n_steps = 2
        elif n_steps % 2:
            n_steps += 1
    tile = -(-rows // n_steps)
    tile = ((tile + SUBLANE - 1) // SUBLANE) * SUBLANE  # multiple of 8 (=STRIP)
    rows_pad = tile * n_steps
    return tile, rows_pad


@partial(jax.jit, static_argnames=("n", "rows_pad", "tile"))
def _run(params, p1, p2, *, n, rows_pad, tile):
    npad = rows_pad * LANE
    grid = (rows_pad // tile,)

    # Single fused relayout: (N,2)+(N,2) -> channel-major (4, rows_pad, 128).
    pts = jnp.concatenate([p1.astype(jnp.float32).T,
                           p2.astype(jnp.float32).T], axis=0)   # (4, n)
    pts = jnp.pad(pts, ((0, 0), (0, npad - n))).reshape(4, rows_pad, LANE)

    cost = pl.CostEstimate(flops=160 * npad,
                           transcendentals=3 * npad,
                           bytes_accessed=44 * npad)

    out = pl.pallas_call(
        _reconstruct_kernel,
        grid=grid,
        in_specs=[
            pl.BlockSpec(memory_space=pltpu.MemorySpace.SMEM),   # packed params
            pl.BlockSpec((4, tile, LANE), lambda i: (0, i, 0)),  # p1|p2 channels
        ],
        out_specs=pl.BlockSpec((7, tile, LANE), lambda i: (0, i, 0)),
        out_shape=jax.ShapeDtypeStruct((7, rows_pad, LANE), jnp.float32),
        compiler_params=pltpu.CompilerParams(
            dimension_semantics=("parallel",)),
        cost_estimate=cost,
    )(params, pts)

    # Epilogue relayout (fused slice + transposes under this jit).
    flat = out.reshape(7, npad)[:, :n]
    pred1 = flat[0:2].T
    pred2 = flat[2:4].T
    output = flat[4:7].T
    return pred1, pred2, output


def reconstruct_forward(p1, p2, alpha, beta, l, D, max_tile_rows=512):
    """p1, p2: (N, 2) float32.  Returns (pred1 (N,2), pred2 (N,2), output (N,3))."""
    R, t, R_inv, R_inv1, R_inv2, _, _ = make_reconstruct_params(alpha, beta, l, D)
    params = _pack_params(R, t, R_inv, R_inv1, R_inv2, l, D)

    n = int(p1.shape[0])
    tile, rows_pad = _choose_tiling(n, max_tile_rows)
    # NOTE: at tile<=512 the double-buffered blocks (4+7 planes, ~5.5 MB) fit
    # every chip's default scoped-VMEM limit; raise vmem_limit_bytes before
    # growing max_tile_rows past 512 (v5e default scoped VMEM is 16 MiB).

    return _run(params, jnp.asarray(p1, jnp.float32), jnp.asarray(p2, jnp.float32),
                n=n, rows_pad=rows_pad, tile=tile)


# ----------------------------------------------------------------------------
# Pure numpy reference (mirrors the PyTorch forward loop) for verification
# ----------------------------------------------------------------------------
def _reference(p1, p2, alpha, beta, l, D):
    R, t, R_inv, R_inv1, R_inv2, T1, T2 = make_reconstruct_params(alpha, beta, l, D)
    n = p1.shape[0]
    out = np.zeros((n, 3), np.float32)
    pr1 = np.zeros((n, 2), np.float32)
    pr2 = np.zeros((n, 2), np.float32)
    for i in range(n):
        ksi1 = p1[i, 0] / D[0]; eta1 = p1[i, 1] / D[0]
        ksi2 = p2[i, 0] / D[1]; eta2 = p2[i, 1] / D[1]
        a = np.array([R[0, 0] - R[2, 0] * ksi2, R[0, 1] - R[2, 1] * ksi2,
                      R[0, 2] - R[2, 2] * ksi2], np.float32)
        b = np.array([R[1, 0] - R[2, 0] * eta2, R[1, 1] - R[2, 1] * eta2,
                      R[1, 2] - R[2, 2] * eta2], np.float32)
        at = (a @ t).item(); bt = (b @ t).item()
        B = np.array([[0.0], [0.0], [at], [bt]], np.float32)
        A = np.stack([np.array([1, 0, -ksi1], np.float32),
                      np.array([0, 1, -eta1], np.float32), a, b])
        C = np.linalg.inv(A.T @ A) @ A.T @ B
        temp = R_inv @ (C - T1)
        ti1 = R_inv1 @ temp + T1
        ti2 = R_inv2 @ temp + T2
        out[i] = temp.squeeze()
        pr1[i, 0] = ti1[0, 0] / ti1[2, 0] * D[0]; pr1[i, 1] = ti1[1, 0] / ti1[2, 0] * D[0]
        pr2[i, 0] = ti2[0, 0] / ti2[2, 0] * D[1]; pr2[i, 1] = ti2[1, 0] / ti2[2, 0] * D[1]
    return pr1, pr2, out


if __name__ == "__main__":
    alpha = [5.0, -3.0]
    beta = [2.0, 4.0]
    l = [10.0, 12.0]
    D = [1.5, 2.0]

    n_points = 8
    key = jax.random.PRNGKey(0)
    k1, k2 = jax.random.split(key)
    p1 = jax.random.normal(k1, (n_points, 2), dtype=jnp.float32)
    p2 = jax.random.normal(k2, (n_points, 2), dtype=jnp.float32)

    pred1, pred2, output = reconstruct_forward(p1, p2, alpha, beta, l, D)
    jax.block_until_ready((pred1, pred2, output))

    # sanity check against the per-point numpy reference
    r1, r2, ro = _reference(np.asarray(p1), np.asarray(p2), alpha, beta, l, D)
    np.testing.assert_allclose(np.asarray(pred1), r1, rtol=5e-3, atol=1e-2)
    np.testing.assert_allclose(np.asarray(pred2), r2, rtol=5e-3, atol=1e-2)
    np.testing.assert_allclose(np.asarray(output), ro, rtol=5e-3, atol=1e-2)

    print("KERNEL_OK")
</pallas_src>

<mosaic_0001>
module attributes {stable_mosaic.version = 11 : i64} {
  func.func @_reconstruct_kernel(%arg0: i32, %arg1: memref<45xf32, #tpu.memory_space<smem>>, %arg2: memref<4x8x128xf32, #tpu.memory_space<vmem>>, %arg3: memref<7x8x128xf32, #tpu.memory_space<vmem>>) attributes {dimension_semantics = [#tpu.dimension_semantics<parallel>], iteration_bounds = array<i64: 1>, scalar_prefetch = 0 : i64, scratch_operands = 0 : i64, tpu.core_type = #tpu.core_type<tc>, window_params = [{transform_indices = @transform_0, window_bounds = array<i64: 45>}, {transform_indices = @transform_1, window_bounds = array<i64: 4, 8, 128>}, {transform_indices = @transform_2, window_bounds = array<i64: 7, 8, 128>}]} {
    %c0 = arith.constant 0 : index
    %0 = memref.load %arg1[%c0] : memref<45xf32, #tpu.memory_space<smem>>
    %c1 = arith.constant 1 : index
    %1 = memref.load %arg1[%c1] : memref<45xf32, #tpu.memory_space<smem>>
    %c2 = arith.constant 2 : index
    %2 = memref.load %arg1[%c2] : memref<45xf32, #tpu.memory_space<smem>>
    %c3 = arith.constant 3 : index
    %3 = memref.load %arg1[%c3] : memref<45xf32, #tpu.memory_space<smem>>
    %c4 = arith.constant 4 : index
    %4 = memref.load %arg1[%c4] : memref<45xf32, #tpu.memory_space<smem>>
    %c5 = arith.constant 5 : index
    %5 = memref.load %arg1[%c5] : memref<45xf32, #tpu.memory_space<smem>>
    %c6 = arith.constant 6 : index
    %6 = memref.load %arg1[%c6] : memref<45xf32, #tpu.memory_space<smem>>
    %c7 = arith.constant 7 : index
    %7 = memref.load %arg1[%c7] : memref<45xf32, #tpu.memory_space<smem>>
    %c8 = arith.constant 8 : index
    %8 = memref.load %arg1[%c8] : memref<45xf32, #tpu.memory_space<smem>>
    %c9 = arith.constant 9 : index
    %9 = memref.load %arg1[%c9] : memref<45xf32, #tpu.memory_space<smem>>
    %c10 = arith.constant 10 : index
    %10 = memref.load %arg1[%c10] : memref<45xf32, #tpu.memory_space<smem>>
    %c11 = arith.constant 11 : index
    %11 = memref.load %arg1[%c11] : memref<45xf32, #tpu.memory_space<smem>>
    %c12 = arith.constant 12 : index
    %12 = memref.load %arg1[%c12] : memref<45xf32, #tpu.memory_space<smem>>
    %c13 = arith.constant 13 : index
    %13 = memref.load %arg1[%c13] : memref<45xf32, #tpu.memory_space<smem>>
    %c14 = arith.constant 14 : index
    %14 = memref.load %arg1[%c14] : memref<45xf32, #tpu.memory_space<smem>>
    %c15 = arith.constant 15 : index
    %15 = memref.load %arg1[%c15] : memref<45xf32, #tpu.memory_space<smem>>
    %c16 = arith.constant 16 : index
    %16 = memref.load %arg1[%c16] : memref<45xf32, #tpu.memory_space<smem>>
    %c17 = arith.constant 17 : index
    %17 = memref.load %arg1[%c17] : memref<45xf32, #tpu.memory_space<smem>>
    %c18 = arith.constant 18 : index
    %18 = memref.load %arg1[%c18] : memref<45xf32, #tpu.memory_space<smem>>
    %c19 = arith.constant 19 : index
    %19 = memref.load %arg1[%c19] : memref<45xf32, #tpu.memory_space<smem>>
    %c20 = arith.constant 20 : index
    %20 = memref.load %arg1[%c20] : memref<45xf32, #tpu.memory_space<smem>>
    %c21 = arith.constant 21 : index
    %21 = memref.load %arg1[%c21] : memref<45xf32, #tpu.memory_space<smem>>
    %c22 = arith.constant 22 : index
    %22 = memref.load %arg1[%c22] : memref<45xf32, #tpu.memory_space<smem>>
    %c23 = arith.constant 23 : index
    %23 = memref.load %arg1[%c23] : memref<45xf32, #tpu.memory_space<smem>>
    %c24 = arith.constant 24 : index
    %24 = memref.load %arg1[%c24] : memref<45xf32, #tpu.memory_space<smem>>
    %c25 = arith.constant 25 : index
    %25 = memref.load %arg1[%c25] : memref<45xf32, #tpu.memory_space<smem>>
    %c26 = arith.constant 26 : index
    %26 = memref.load %arg1[%c26] : memref<45xf32, #tpu.memory_space<smem>>
    %c27 = arith.constant 27 : index
    %27 = memref.load %arg1[%c27] : memref<45xf32, #tpu.memory_space<smem>>
    %c28 = arith.constant 28 : index
    %28 = memref.load %arg1[%c28] : memref<45xf32, #tpu.memory_space<smem>>
    %c29 = arith.constant 29 : index
    %29 = memref.load %arg1[%c29] : memref<45xf32, #tpu.memory_space<smem>>
    %c30 = arith.constant 30 : index
    %30 = memref.load %arg1[%c30] : memref<45xf32, #tpu.memory_space<smem>>
    %c31 = arith.constant 31 : index
    %31 = memref.load %arg1[%c31] : memref<45xf32, #tpu.memory_space<smem>>
    %c32 = arith.constant 32 : index
    %32 = memref.load %arg1[%c32] : memref<45xf32, #tpu.memory_space<smem>>
    %c33 = arith.constant 33 : index
    %33 = memref.load %arg1[%c33] : memref<45xf32, #tpu.memory_space<smem>>
    %c34 = arith.constant 34 : index
    %34 = memref.load %arg1[%c34] : memref<45xf32, #tpu.memory_space<smem>>
    %c35 = arith.constant 35 : index
    %35 = memref.load %arg1[%c35] : memref<45xf32, #tpu.memory_space<smem>>
    %c36 = arith.constant 36 : index
    %36 = memref.load %arg1[%c36] : memref<45xf32, #tpu.memory_space<smem>>
    %c37 = arith.constant 37 : index
    %37 = memref.load %arg1[%c37] : memref<45xf32, #tpu.memory_space<smem>>
    %c38 = arith.constant 38 : index
    %38 = memref.load %arg1[%c38] : memref<45xf32, #tpu.memory_space<smem>>
    %c39 = arith.constant 39 : index
    %39 = memref.load %arg1[%c39] : memref<45xf32, #tpu.memory_space<smem>>
    %c40 = arith.constant 40 : index
    %40 = memref.load %arg1[%c40] : memref<45xf32, #tpu.memory_space<smem>>
    %c41 = arith.constant 41 : index
    %41 = memref.load %arg1[%c41] : memref<45xf32, #tpu.memory_space<smem>>
    %c42 = arith.constant 42 : index
    %42 = memref.load %arg1[%c42] : memref<45xf32, #tpu.memory_space<smem>>
    %c43 = arith.constant 43 : index
    %43 = memref.load %arg1[%c43] : memref<45xf32, #tpu.memory_space<smem>>
    %c44 = arith.constant 44 : index
    %44 = memref.load %arg1[%c44] : memref<45xf32, #tpu.memory_space<smem>>
    %c0_i32 = arith.constant 0 : i32
    %c8_i32 = arith.constant 8 : i32
    %45 = arith.muli %c0_i32, %c8_i32 : i32
    %46 = tpu.assume_multiple %45, 8 : i32
    %c0_0 = arith.constant 0 : index
    %47 = arith.index_cast %46 : i32 to index
    %c0_1 = arith.constant 0 : index
    %48 = vector.load %arg2[%c0_0, %47, %c0_1] : memref<4x8x128xf32, #tpu.memory_space<vmem>>, vector<1x8x128xf32>
    %49 = vector.shape_cast %48 : vector<1x8x128xf32> to vector<8x128xf32>
    %c1_2 = arith.constant 1 : index
    %50 = arith.index_cast %46 : i32 to index
    %c0_3 = arith.constant 0 : index
    %51 = vector.load %arg2[%c1_2, %50, %c0_3] : memref<4x8x128xf32, #tpu.memory_space<vmem>>, vector<1x8x128xf32>
    %52 = vector.shape_cast %51 : vector<1x8x128xf32> to vector<8x128xf32>
    %c2_4 = arith.constant 2 : index
    %53 = arith.index_cast %46 : i32 to index
    %c0_5 = arith.constant 0 : index
    %54 = vector.load %arg2[%c2_4, %53, %c0_5] : memref<4x8x128xf32, #tpu.memory_space<vmem>>, vector<1x8x128xf32>
    %55 = vector.shape_cast %54 : vector<1x8x128xf32> to vector<8x128xf32>
    %c3_6 = arith.constant 3 : index
    %56 = arith.index_cast %46 : i32 to index
    %c0_7 = arith.constant 0 : index
    %57 = vector.load %arg2[%c3_6, %56, %c0_7] : memref<4x8x128xf32, #tpu.memory_space<vmem>>, vector<1x8x128xf32>
    %58 = vector.shape_cast %57 : vector<1x8x128xf32> to vector<8x128xf32>
    %59 = vector.broadcast %41 : f32 to vector<8x128xf32>
    %60 = arith.mulf %49, %59 : vector<8x128xf32>
    %61 = vector.broadcast %41 : f32 to vector<8x128xf32>
    %62 = arith.mulf %52, %61 : vector<8x128xf32>
    %63 = vector.broadcast %42 : f32 to vector<8x128xf32>
    %64 = arith.mulf %55, %63 : vector<8x128xf32>
    %65 = vector.broadcast %42 : f32 to vector<8x128xf32>
    %66 = arith.mulf %58, %65 : vector<8x128xf32>
    %67 = vector.broadcast %6 : f32 to vector<8x128xf32>
    %68 = arith.mulf %67, %64 : vector<8x128xf32>
    %69 = vector.broadcast %0 : f32 to vector<8x128xf32>
    %70 = arith.subf %69, %68 : vector<8x128xf32>
    %71 = vector.broadcast %7 : f32 to vector<8x128xf32>
    %72 = arith.mulf %71, %64 : vector<8x128xf32>
    %73 = vector.broadcast %1 : f32 to vector<8x128xf32>
    %74 = arith.subf %73, %72 : vector<8x128xf32>
    %75 = vector.broadcast %8 : f32 to vector<8x128xf32>
    %76 = arith.mulf %75, %64 : vector<8x128xf32>
    %77 = vector.broadcast %2 : f32 to vector<8x128xf32>
    %78 = arith.subf %77, %76 : vector<8x128xf32>
    %79 = vector.broadcast %6 : f32 to vector<8x128xf32>
    %80 = arith.mulf %79, %66 : vector<8x128xf32>
    %81 = vector.broadcast %3 : f32 to vector<8x128xf32>
    %82 = arith.subf %81, %80 : vector<8x128xf32>
    %83 = vector.broadcast %7 : f32 to vector<8x128xf32>
    %84 = arith.mulf %83, %66 : vector<8x128xf32>
    %85 = vector.broadcast %4 : f32 to vector<8x128xf32>
    %86 = arith.subf %85, %84 : vector<8x128xf32>
    %87 = vector.broadcast %8 : f32 to vector<8x128xf32>
    %88 = arith.mulf %87, %66 : vector<8x128xf32>
    %89 = vector.broadcast %5 : f32 to vector<8x128xf32>
    %90 = arith.subf %89, %88 : vector<8x128xf32>
    %91 = vector.broadcast %11 : f32 to vector<8x128xf32>
    %92 = arith.mulf %91, %64 : vector<8x128xf32>
    %93 = vector.broadcast %9 : f32 to vector<8x128xf32>
    %94 = arith.subf %93, %92 : vector<8x128xf32>
    %95 = vector.broadcast %11 : f32 to vector<8x128xf32>
    %96 = arith.mulf %95, %66 : vector<8x128xf32>
    %97 = vector.broadcast %10 : f32 to vector<8x128xf32>
    %98 = arith.subf %97, %96 : vector<8x128xf32>
    %99 = arith.mulf %70, %70 : vector<8x128xf32>
    %cst = arith.constant 1.000000e+00 : f32
    %100 = vector.broadcast %cst : f32 to vector<8x128xf32>
    %101 = arith.addf %100, %99 : vector<8x128xf32>
    %102 = arith.mulf %82, %82 : vector<8x128xf32>
    %103 = arith.addf %101, %102 : vector<8x128xf32>
    %104 = arith.mulf %70, %74 : vector<8x128xf32>
    %105 = arith.mulf %82, %86 : vector<8x128xf32>
    %106 = arith.addf %104, %105 : vector<8x128xf32>
    %cst_8 = arith.constant 0.000000e+00 : f32
    %107 = vector.broadcast %cst_8 : f32 to vector<8x128xf32>
    %108 = arith.subf %107, %60 : vector<8x128xf32>
    %109 = arith.mulf %70, %78 : vector<8x128xf32>
    %110 = arith.addf %108, %109 : vector<8x128xf32>
    %111 = arith.mulf %82, %90 : vector<8x128xf32>
    %112 = arith.addf %110, %111 : vector<8x128xf32>
    %113 = arith.mulf %74, %74 : vector<8x128xf32>
    %cst_9 = arith.constant 1.000000e+00 : f32
    %114 = vector.broadcast %cst_9 : f32 to vector<8x128xf32>
    %115 = arith.addf %114, %113 : vector<8x128xf32>
    %116 = arith.mulf %86, %86 : vector<8x128xf32>
    %117 = arith.addf %115, %116 : vector<8x128xf32>
    %cst_10 = arith.constant 0.000000e+00 : f32
    %118 = vector.broadcast %cst_10 : f32 to vector<8x128xf32>
    %119 = arith.subf %118, %62 : vector<8x128xf32>
    %120 = arith.mulf %74, %78 : vector<8x128xf32>
    %121 = arith.addf %119, %120 : vector<8x128xf32>
    %122 = arith.mulf %86, %90 : vector<8x128xf32>
    %123 = arith.addf %121, %122 : vector<8x128xf32>
    %124 = arith.mulf %60, %60 : vector<8x128xf32>
    %125 = arith.mulf %62, %62 : vector<8x128xf32>
    %126 = arith.addf %124, %125 : vector<8x128xf32>
    %127 = arith.mulf %78, %78 : vector<8x128xf32>
    %128 = arith.addf %126, %127 : vector<8x128xf32>
    %129 = arith.mulf %90, %90 : vector<8x128xf32>
    %130 = arith.addf %128, %129 : vector<8x128xf32>
    %131 = arith.mulf %70, %94 : vector<8x128xf32>
    %132 = arith.mulf %82, %98 : vector<8x128xf32>
    %133 = arith.addf %131, %132 : vector<8x128xf32>
    %134 = arith.mulf %74, %94 : vector<8x128xf32>
    %135 = arith.mulf %86, %98 : vector<8x128xf32>
    %136 = arith.addf %134, %135 : vector<8x128xf32>
    %137 = arith.mulf %78, %94 : vector<8x128xf32>
    %138 = arith.mulf %90, %98 : vector<8x128xf32>
    %139 = arith.addf %137, %138 : vector<8x128xf32>
    %140 = arith.mulf %117, %130 : vector<8x128xf32>
    %141 = arith.mulf %123, %123 : vector<8x128xf32>
    %142 = arith.subf %140, %141 : vector<8x128xf32>
    %143 = arith.mulf %112, %123 : vector<8x128xf32>
    %144 = arith.mulf %106, %130 : vector<8x128xf32>
    %145 = arith.subf %143, %144 : vector<8x128xf32>
    %146 = arith.mulf %106, %123 : vector<8x128xf32>
    %147 = arith.mulf %112, %117 : vector<8x128xf32>
    %148 = arith.subf %146, %147 : vector<8x128xf32>
    %149 = arith.mulf %103, %130 : vector<8x128xf32>
    %150 = arith.mulf %112, %112 : vector<8x128xf32>
    %151 = arith.subf %149, %150 : vector<8x128xf32>
    %152 = arith.mulf %106, %112 : vector<8x128xf32>
    %153 = arith.mulf %103, %123 : vector<8x128xf32>
    %154 = arith.subf %152, %153 : vector<8x128xf32>
    %155 = arith.mulf %103, %117 : vector<8x128xf32>
    %156 = arith.mulf %106, %106 : vector<8x128xf32>
    %157 = arith.subf %155, %156 : vector<8x128xf32>
    %158 = arith.mulf %103, %142 : vector<8x128xf32>
    %159 = arith.mulf %106, %145 : vector<8x128xf32>
    %160 = arith.addf %158, %159 : vector<8x128xf32>
    %161 = arith.mulf %112, %148 : vector<8x128xf32>
    %162 = arith.addf %160, %161 : vector<8x128xf32>
    %163 = tpu.reciprocal %162 {approx = true} : vector<8x128xf32> -> vector<8x128xf32>
    %164 = arith.mulf %162, %163 : vector<8x128xf32>
    %cst_11 = arith.constant 2.000000e+00 : f32
    %165 = vector.broadcast %cst_11 : f32 to vector<8x128xf32>
    %166 = arith.subf %165, %164 : vector<8x128xf32>
    %167 = arith.mulf %163, %166 : vector<8x128xf32>
    %168 = arith.mulf %142, %133 : vector<8x128xf32>
    %169 = arith.mulf %145, %136 : vector<8x128xf32>
    %170 = arith.addf %168, %169 : vector<8x128xf32>
    %171 = arith.mulf %148, %139 : vector<8x128xf32>
    %172 = arith.addf %170, %171 : vector<8x128xf32>
    %173 = arith.mulf %172, %167 : vector<8x128xf32>
    %174 = arith.mulf %145, %133 : vector<8x128xf32>
    %175 = arith.mulf %151, %136 : vector<8x128xf32>
    %176 = arith.addf %174, %175 : vector<8x128xf32>
    %177 = arith.mulf %154, %139 : vector<8x128xf32>
    %178 = arith.addf %176, %177 : vector<8x128xf32>
    %179 = arith.mulf %178, %167 : vector<8x128xf32>
    %180 = arith.mulf %148, %133 : vector<8x128xf32>
    %181 = arith.mulf %154, %136 : vector<8x128xf32>
    %182 = arith.addf %180, %181 : vector<8x128xf32>
    %183 = arith.mulf %157, %139 : vector<8x128xf32>
    %184 = arith.addf %182, %183 : vector<8x128xf32>
    %185 = arith.mulf %184, %167 : vector<8x128xf32>
    %186 = vector.broadcast %12 : f32 to vector<8x128xf32>
    %187 = arith.subf %185, %186 : vector<8x128xf32>
    %188 = vector.broadcast %14 : f32 to vector<8x128xf32>
    %189 = arith.mulf %188, %173 : vector<8x128xf32>
    %190 = vector.broadcast %15 : f32 to vector<8x128xf32>
    %191 = arith.mulf %190, %179 : vector<8x128xf32>
    %192 = arith.addf %189, %191 : vector<8x128xf32>
    %193 = vector.broadcast %16 : f32 to vector<8x128xf32>
    %194 = arith.mulf %193, %187 : vector<8x128xf32>
    %195 = arith.addf %192, %194 : vector<8x128xf32>
    %196 = vector.broadcast %17 : f32 to vector<8x128xf32>
    %197 = arith.mulf %196, %173 : vector<8x128xf32>
    %198 = vector.broadcast %18 : f32 to vector<8x128xf32>
    %199 = arith.mulf %198, %179 : vector<8x128xf32>
    %200 = arith.addf %197, %199 : vector<8x128xf32>
    %201 = vector.broadcast %19 : f32 to vector<8x128xf32>
    %202 = arith.mulf %201, %187 : vector<8x128xf32>
    %203 = arith.addf %200, %202 : vector<8x128xf32>
    %204 = vector.broadcast %20 : f32 to vector<8x128xf32>
    %205 = arith.mulf %204, %173 : vector<8x128xf32>
    %206 = vector.broadcast %21 : f32 to vector<8x128xf32>
    %207 = arith.mulf %206, %179 : vector<8x128xf32>
    %208 = arith.addf %205, %207 : vector<8x128xf32>
    %209 = vector.broadcast %22 : f32 to vector<8x128xf32>
    %210 = arith.mulf %209, %187 : vector<8x128xf32>
    %211 = arith.addf %208, %210 : vector<8x128xf32>
    %212 = vector.broadcast %23 : f32 to vector<8x128xf32>
    %213 = arith.mulf %212, %195 : vector<8x128xf32>
    %214 = vector.broadcast %24 : f32 to vector<8x128xf32>
    %215 = arith.mulf %214, %203 : vector<8x128xf32>
    %216 = arith.addf %213, %215 : vector<8x128xf32>
    %217 = vector.broadcast %25 : f32 to vector<8x128xf32>
    %218 = arith.mulf %217, %211 : vector<8x128xf32>
    %219 = arith.addf %216, %218 : vector<8x128xf32>
    %220 = vector.broadcast %26 : f32 to vector<8x128xf32>
    %221 = arith.mulf %220, %195 : vector<8x128xf32>
    %222 = vector.broadcast %27 : f32 to vector<8x128xf32>
    %223 = arith.mulf %222, %203 : vector<8x128xf32>
    %224 = arith.addf %221, %223 : vector<8x128xf32>
    %225 = vector.broadcast %28 : f32 to vector<8x128xf32>
    %226 = arith.mulf %225, %211 : vector<8x128xf32>
    %227 = arith.addf %224, %226 : vector<8x128xf32>
    %228 = vector.broadcast %29 : f32 to vector<8x128xf32>
    %229 = arith.mulf %228, %195 : vector<8x128xf32>
    %230 = vector.broadcast %30 : f32 to vector<8x128xf32>
    %231 = arith.mulf %230, %203 : vector<8x128xf32>
    %232 = arith.addf %229, %231 : vector<8x128xf32>
    %233 = vector.broadcast %31 : f32 to vector<8x128xf32>
    %234 = arith.mulf %233, %211 : vector<8x128xf32>
    %235 = arith.addf %232, %234 : vector<8x128xf32>
    %236 = vector.broadcast %12 : f32 to vector<8x128xf32>
    %237 = arith.addf %235, %236 : vector<8x128xf32>
    %238 = vector.broadcast %32 : f32 to vector<8x128xf32>
    %239 = arith.mulf %238, %195 : vector<8x128xf32>
    %240 = vector.broadcast %33 : f32 to vector<8x128xf32>
    %241 = arith.mulf %240, %203 : vector<8x128xf32>
    %242 = arith.addf %239, %241 : vector<8x128xf32>
    %243 = vector.broadcast %34 : f32 to vector<8x128xf32>
    %244 = arith.mulf %243, %211 : vector<8x128xf32>
    %245 = arith.addf %242, %244 : vector<8x128xf32>
    %246 = vector.broadcast %35 : f32 to vector<8x128xf32>
    %247 = arith.mulf %246, %195 : vector<8x128xf32>
    %248 = vector.broadcast %36 : f32 to vector<8x128xf32>
    %249 = arith.mulf %248, %203 : vector<8x128xf32>
    %250 = arith.addf %247, %249 : vector<8x128xf32>
    %251 = vector.broadcast %37 : f32 to vector<8x128xf32>
    %252 = arith.mulf %251, %211 : vector<8x128xf32>
    %253 = arith.addf %250, %252 : vector<8x128xf32>
    %254 = vector.broadcast %38 : f32 to vector<8x128xf32>
    %255 = arith.mulf %254, %195 : vector<8x128xf32>
    %256 = vector.broadcast %39 : f32 to vector<8x128xf32>
    %257 = arith.mulf %256, %203 : vector<8x128xf32>
    %258 = arith.addf %255, %257 : vector<8x128xf32>
    %259 = vector.broadcast %40 : f32 to vector<8x128xf32>
    %260 = arith.mulf %259, %211 : vector<8x128xf32>
    %261 = arith.addf %258, %260 : vector<8x128xf32>
    %262 = vector.broadcast %13 : f32 to vector<8x128xf32>
    %263 = arith.addf %261, %262 : vector<8x128xf32>
    %264 = tpu.reciprocal %237 {approx = true} : vector<8x128xf32> -> vector<8x128xf32>
    %265 = vector.broadcast %43 : f32 to vector<8x128xf32>
    %266 = arith.mulf %264, %265 : vector<8x128xf32>
    %267 = tpu.reciprocal %263 {approx = true} : vector<8x128xf32> -> vector<8x128xf32>
    %268 = vector.broadcast %44 : f32 to vector<8x128xf32>
    %269 = arith.mulf %267, %268 : vector<8x128xf32>
    %270 = arith.mulf %219, %266 : vector<8x128xf32>
    %c0_12 = arith.constant 0 : index
    %271 = arith.index_cast %46 : i32 to index
    %c0_13 = arith.constant 0 : index
    %272 = vector.load %arg3[%c0_12, %271, %c0_13] : memref<7x8x128xf32, #tpu.memory_space<vmem>>, vector<1x8x128xf32>
    %273 = vector.shape_cast %272 : vector<1x8x128xf32> to vector<8x128xf32>
    %274 = vector.shape_cast %270 : vector<8x128xf32> to vector<1x8x128xf32>
    tpu.vector_store %arg3[%c0_12, %271, %c0_13], %274 {strides = array<i32>} : memref<7x8x128xf32, #tpu.memory_space<vmem>>, vector<1x8x128xf32>,
    %275 = arith.mulf %227, %266 : vector<8x128xf32>
    %c1_14 = arith.constant 1 : index
    %276 = arith.index_cast %46 : i32 to index
    %c0_15 = arith.constant 0 : index
    %277 = vector.load %arg3[%c1_14, %276, %c0_15] : memref<7x8x128xf32, #tpu.memory_space<vmem>>, vector<1x8x128xf32>
    %278 = vector.shape_cast %277 : vector<1x8x128xf32> to vector<8x128xf32>
    %279 = vector.shape_cast %275 : vector<8x128xf32> to vector<1x8x128xf32>
    tpu.vector_store %arg3[%c1_14, %276, %c0_15], %279 {strides = array<i32>} : memref<7x8x128xf32, #tpu.memory_space<vmem>>, vector<1x8x128xf32>,
    %280 = arith.mulf %245, %269 : vector<8x128xf32>
    %c2_16 = arith.constant 2 : index
    %281 = arith.index_cast %46 : i32 to index
    %c0_17 = arith.constant 0 : index
    %282 = vector.load %arg3[%c2_16, %281, %c0_17] : memref<7x8x128xf32, #tpu.memory_space<vmem>>, vector<1x8x128xf32>
    %283 = vector.shape_cast %282 : vector<1x8x128xf32> to vector<8x128xf32>
    %284 = vector.shape_cast %280 : vector<8x128xf32> to vector<1x8x128xf32>
    tpu.vector_store %arg3[%c2_16, %281, %c0_17], %284 {strides = array<i32>} : memref<7x8x128xf32, #tpu.memory_space<vmem>>, vector<1x8x128xf32>,
    %285 = arith.mulf %253, %269 : vector<8x128xf32>
    %c3_18 = arith.constant 3 : index
    %286 = arith.index_cast %46 : i32 to index
    %c0_19 = arith.constant 0 : index
    %287 = vector.load %arg3[%c3_18, %286, %c0_19] : memref<7x8x128xf32, #tpu.memory_space<vmem>>, vector<1x8x128xf32>
    %288 = vector.shape_cast %287 : vector<1x8x128xf32> to vector<8x128xf32>
    %289 = vector.shape_cast %285 : vector<8x128xf32> to vector<1x8x128xf32>
    tpu.vector_store %arg3[%c3_18, %286, %c0_19], %289 {strides = array<i32>} : memref<7x8x128xf32, #tpu.memory_space<vmem>>, vector<1x8x128xf32>,
    %c4_20 = arith.constant 4 : index
    %290 = arith.index_cast %46 : i32 to index
    %c0_21 = arith.constant 0 : index
    %291 = vector.load %arg3[%c4_20, %290, %c0_21] : memref<7x8x128xf32, #tpu.memory_space<vmem>>, vector<1x8x128xf32>
    %292 = vector.shape_cast %291 : vector<1x8x128xf32> to vector<8x128xf32>
    %293 = vector.shape_cast %195 : vector<8x128xf32> to vector<1x8x128xf32>
    tpu.vector_store %arg3[%c4_20, %290, %c0_21], %293 {strides = array<i32>} : memref<7x8x128xf32, #tpu.memory_space<vmem>>, vector<1x8x128xf32>,
    %c5_22 = arith.constant 5 : index
    %294 = arith.index_cast %46 : i32 to index
    %c0_23 = arith.constant 0 : index
    %295 = vector.load %arg3[%c5_22, %294, %c0_23] : memref<7x8x128xf32, #tpu.memory_space<vmem>>, vector<1x8x128xf32>
    %296 = vector.shape_cast %295 : vector<1x8x128xf32> to vector<8x128xf32>
    %297 = vector.shape_cast %203 : vector<8x128xf32> to vector<1x8x128xf32>
    tpu.vector_store %arg3[%c5_22, %294, %c0_23], %297 {strides = array<i32>} : memref<7x8x128xf32, #tpu.memory_space<vmem>>, vector<1x8x128xf32>,
    %c6_24 = arith.constant 6 : index
    %298 = arith.index_cast %46 : i32 to index
    %c0_25 = arith.constant 0 : index
    %299 = vector.load %arg3[%c6_24, %298, %c0_25] : memref<7x8x128xf32, #tpu.memory_space<vmem>>, vector<1x8x128xf32>
    %300 = vector.shape_cast %299 : vector<1x8x128xf32> to vector<8x128xf32>
    %301 = vector.shape_cast %211 : vector<8x128xf32> to vector<1x8x128xf32>
    tpu.vector_store %arg3[%c6_24, %298, %c0_25], %301 {strides = array<i32>} : memref<7x8x128xf32, #tpu.memory_space<vmem>>, vector<1x8x128xf32>,
    %c1_i32 = arith.constant 1 : i32
    return
  }
  func.func @transform_0(%arg0: i32) -> i32 {
    %c0_i32 = arith.constant 0 : i32
    %c0_i32_0 = arith.constant 0 : i32
    return %c0_i32 : i32
  }
  func.func @transform_1(%arg0: i32) -> (i32, i32, i32) {
    %c0_i32 = arith.constant 0 : i32
    %c0_i32_0 = arith.constant 0 : i32
    %c0_i32_1 = arith.constant 0 : i32
    return %c0_i32, %arg0, %c0_i32_0 : i32, i32, i32
  }
  func.func @transform_2(%arg0: i32) -> (i32, i32, i32) {
    %c0_i32 = arith.constant 0 : i32
    %c0_i32_0 = arith.constant 0 : i32
    %c0_i32_1 = arith.constant 0 : i32
    return %c0_i32, %arg0, %c0_i32_0 : i32, i32, i32
  }
}

</mosaic_0001>

<bundles_post_ra>
// kernel: _run.1
= control target key start
LH: loop header
LB: loop body
LE: loop exit
PB: predicated region body
PF: predicated region fallthrough
CT: control target
= control target key end

     0   :  { %7 = vsyncpa [#allocation3], 0  ;;  %s562_s0 = inlined_call_operand.vmem [shape: f32[45], index: 0, kind: input, shape index: {}]   ;;  %s563_s1 = inlined_call_operand.vmem [shape: f32[4,8,128], index: 1, kind: input, shape index: {}]   ;;  %s564_s2 = inlined_call_operand.vmem [shape: f32[7,8,128], index: 2, kind: output, shape index: {}]  }
   0x1   :  { %s14_s11 = sshll.u32 %s562_s0, 4  ;;  %s15_s11 = int_to_ptr.vmem [resolvable:$true] %s14_s11 }
   0x2   :  { %s372_s12 = scalar_lea.vmem %s15_s11, 16  ;;  %p377_p1 = scmp.lt.s32.totalorder %s15_s11, %s15_s11 }
   0x3   :  { %p373_p0 = scmp.ne.s32.totalorder %s15_s11, %s372_s12  ;;  %p378_p2 = scmp.lt.s32.totalorder %s372_s12, %s372_s12 }
   0x5   :  { %p379_p3 = por %p378_p2, %p377_p1 }
   0x7   :  { %p380_p4 = pnand %p379_p3, %p373_p0 }
   0x9   :  { %383 = shalt.err (!%p380_p4)
}
   0xa   :  { %s386_s13 = smov [#allocation2]  }
   0xb   :  { %17 = dma.vmem_to_smem %s15_s11, 16, %s386_s13, [#allocation3]  }
   0xc   :  { %384 = dma.done.wait [#allocation3], 16  }
   0xd   :  { %385 = vsyncadd [#allocation3], 4294967280 }
   0xe   :  { %23 = sfence }
   0xf   :  { %s405_s14 = sld [smem:[#allocation2]]  ;;  %v69_v0 = vld [vmem:[%s563_s1] sm:$0xff]  ;;  %v357_v1 = vld [vmem:[%s563_s1 + $0x10] sm:$0xff]  ;;  %v358_v2 = vld [vmem:[%s563_s1 + $0x18] sm:$0xff] }
  0x10   :  { %s407_s15 = sld [smem:[#allocation2 + $0x1]]  ;;  %v356_v3 = vld [vmem:[%s563_s1 + $0x8] sm:$0xff] }
  0x11   :  { %s409_s0 = sld [smem:[#allocation2 + $0x2]] }
  0x12   :  { %s411_s16 = sld [smem:[#allocation2 + $0x3]] }
  0x13   :  { %s413_s17 = sld [smem:[#allocation2 + $0x4]] }
  0x14   :  { %s415_s18 = sld [smem:[#allocation2 + $0x5]] }
  0x15   :  { %s317_s19 = sld [smem:[#allocation2 + $0x6]]  ;;  %v87_v5 = vstv %s405_s14 }
  0x16   :  { %s318_s20 = sld [smem:[#allocation2 + $0x7]]  ;;  %v91_v6 = vstv %s407_s15 }
  0x17   :  { %s319_s21 = sld [smem:[#allocation2 + $0x8]]  ;;  %v95_v13 = vstv %s409_s0 }
  0x18   :  { %s352_s22 = sld [smem:[#allocation2 + $0x29]]  ;;  %v98_v14 = vstv %s411_s16 }
  0x19   :  { %s353_s23 = sld [smem:[#allocation2 + $0x2a]]  ;;  %v101_v17 = vstv %s413_s17 }
  0x1a   :  { %s433_s4 = sld [smem:[#allocation2 + $0xb]]  ;;  %v104_v18 = vstv %s415_s18 }
  0x1b   :  { %v85_v8 = vstv %s317_s19  ;;  %s439_s1 = sld [smem:[#allocation2 + $0x9]] }
  0x1c   :  { %v89_v9 = vstv %s318_s20  ;;  %s442_s5 = sld [smem:[#allocation2 + $0xa]] }
  0x1d   :  { %v93_v10 = vstv %s319_s21  ;;  %s451_s6 = sld [smem:[#allocation2 + $0xc]] }
  0x1e   :  { %v79_v4 = vstv %s352_s22  ;;  %s453_s7 = sld [smem:[#allocation2 + $0xe]] }
  0x1f   :  { %v82_v7 = vstv %s353_s23  ;;  %v80_v15 = vmul.f32 %v79_v4, %v69_v0  ;;  %v81_v16 = vmul.f32 %v356_v3, %v79_v4  ;;  %s455_s8 = sld [smem:[#allocation2 + $0xf]] }
  0x20   :  { %v83_v11 = vmul.f32 %v357_v1, %v82_v7  ;;  %v84_v12 = vmul.f32 %v358_v2, %v82_v7  ;;  %v106_v45 = vstv %s433_s4  ;;  %s457_s9 = sld [smem:[#allocation2 + $0x10]] }
  0x21   :  { %v120_v25 = vsub.f32 0.0, %v80_v15  ;;  %v134_v32 = vmul.f32 %v80_v15, %v80_v15  ;;  %v135_v33 = vmul.f32 %v81_v16, %v81_v16  ;;  %v129_v37 = vsub.f32 0.0, %v81_v16  ;;  %s459_s10 = sld [smem:[#allocation2 + $0x11]] }
  0x22   :  { %v86_v19 = vmul.f32 %v85_v8, %v83_v11  ;;  %v90_v20 = vmul.f32 %v89_v9, %v83_v11  ;;  %v94_v21 = vmul.f32 %v93_v10, %v83_v11  ;;  %v97_v22 = vmul.f32 %v85_v8, %v84_v12  ;;  %s461_s11 = sld [smem:[#allocation2 + $0x12]] }
  0x23   :  { %v100_v23 = vmul.f32 %v89_v9, %v84_v12  ;;  %v103_v24 = vmul.f32 %v93_v10, %v84_v12  ;;  %v136_v47 = vadd.f32 %v135_v33, %v134_v32  ;;  %v108_v58 = vstv %s439_s1  ;;  %s463_s12 = sld [smem:[#allocation2 + $0x13]] }
  0x24   :  { %v88_v26 = vsub.f32 %v87_v5, %v86_v19  ;;  %v92_v27 = vsub.f32 %v91_v6, %v90_v20  ;;  %v437_v28 = vsub.f32 %v95_v13, %v94_v21  ;;  %v99_v29 = vsub.f32 %v98_v14, %v97_v22  ;;  %s465_s13 = sld [smem:[#allocation2 + $0x14]] }
  0x25   :  { %v102_v30 = vsub.f32 %v101_v17, %v100_v23  ;;  %v105_v31 = vsub.f32 %v104_v18, %v103_v24  ;;  %v107_v61 = vmul.f32 %v106_v45, %v83_v11  ;;  %v110_v1 = vmul.f32 %v106_v45, %v84_v12  ;;  %s467_s14 = sld [smem:[#allocation2 + $0x15]] }
  0x26   :  { %v113_v34 = vmul.f32 %v88_v26, %v88_v26  ;;  %v117_v35 = vmul.f32 %v92_v27, %v88_v26  ;;  %v121_v36 = vmul.f32 %v437_v28, %v88_v26  ;;  %v125_v40 = vmul.f32 %v92_v27, %v92_v27  ;;  %s469_s15 = sld [smem:[#allocation2 + $0x16]] }
  0x27   :  { %v118_v38 = vmul.f32 %v102_v30, %v99_v29  ;;  %v123_v39 = vmul.f32 %v105_v31, %v99_v29  ;;  %v127_v41 = vmul.f32 %v102_v30, %v102_v30  ;;  %v130_v43 = vmul.f32 %v437_v28, %v92_v27  ;;  %s471_s0 = sld [smem:[#allocation2 + $0x1d]] }
  0x28   :  { %v122_v42 = vadd.f32 %v121_v36, %v120_v25  ;;  %v132_v44 = vmul.f32 %v105_v31, %v102_v30  ;;  %v126_v46 = vadd.f32 1.0, %v125_v40  ;;  %v137_v48 = vmul.f32 %v437_v28, %v437_v28  ;;  %s473_s16 = sld [smem:[#allocation2 + $0x1e]] }
  0x29   :  { %v115_v49 = vmul.f32 %v99_v29, %v99_v29  ;;  %v131_v51 = vadd.f32 %v130_v43, %v129_v37  ;;  %v139_v52 = vmul.f32 %v105_v31, %v105_v31  ;;  %v114_v53 = vadd.f32 1.0, %v113_v34  ;;  %s475_s17 = sld [smem:[#allocation2 + $0x1f]] }
  0x2a   :  { %v124_v50 = vadd.f32 %v123_v39, %v122_v42  ;;  %v119_v54 = vadd.f32 %v118_v38, %v117_v35  ;;  %v128_v55 = vadd.f32 %v127_v41, %v126_v46  ;;  %v138_v56 = vadd.f32 %v137_v48, %v136_v47  ;;  %s483_s18 = sld [smem:[#allocation2 + $0x26]] }
  0x2b   :  { %v133_v57 = vadd.f32 %v132_v44, %v131_v51  ;;  %v116_v2 = vadd.f32 %v115_v49, %v114_v53  ;;  %v111_v5 = vstv %s442_s5  ;;  %v109_v9 = vsub.f32 %v108_v58, %v107_v61  ;;  %s486_s19 = sld [smem:[#allocation2 + $0x27]] }
  0x2c   :  { %v140_v59 = vadd.f32 %v139_v52, %v138_v56  ;;  %v157_v60 = vmul.f32 %v128_v55, %v124_v50  ;;  %v112_v10 = vsub.f32 %v111_v5, %v110_v1  ;;  %v160_v12 = vmul.f32 %v124_v50, %v124_v50  ;;  %s491_s20 = sld [smem:[#allocation2 + $0x28]] }
  0x2d   :  { %v151_v62 = vmul.f32 %v133_v57, %v133_v57  ;;  %v153_v63 = vmul.f32 %v133_v57, %v124_v50  ;;  %v156_v0 = vmul.f32 %v133_v57, %v119_v54  ;;  %v141_v17 = vmul.f32 %v109_v9, %v88_v26  ;;  %s493_s21 = sld [smem:[#allocation2 + $0x17]] }
  0x2e   :  { %v150_v3 = vmul.f32 %v140_v59, %v128_v55  ;;  %v154_v4 = vmul.f32 %v140_v59, %v119_v54  ;;  %v142_v18 = vmul.f32 %v112_v10, %v99_v29  ;;  %v144_v19 = vmul.f32 %v109_v9, %v92_v27  ;;  %s495_s22 = sld [smem:[#allocation2 + $0x18]] }
  0x2f   :  { %v158_v6 = vsub.f32 %v156_v0, %v157_v60  ;;  %v145_v20 = vmul.f32 %v112_v10, %v102_v30  ;;  %v159_v21 = vmul.f32 %v140_v59, %v116_v2  ;;  %v162_v22 = vmul.f32 %v124_v50, %v119_v54  ;;  %s500_s23 = sld [smem:[#allocation2 + $0xd]] }
  0x30   :  { %v152_v7 = vsub.f32 %v150_v3, %v151_v62  ;;  %v155_v8 = vsub.f32 %v153_v63, %v154_v4  ;;  %v163_v23 = vmul.f32 %v133_v57, %v116_v2  ;;  %v143_v24 = vadd.f32 %v142_v18, %v141_v17  ;;  %s502_s24 = sld [smem:[#allocation2 + $0x1a]] }
  0x31   :  { %v171_v15 = vmul.f32 %v158_v6, %v124_v50  ;;  %v147_v25 = vmul.f32 %v109_v9, %v437_v28  ;;  %v146_v32 = vadd.f32 %v145_v20, %v144_v19  ;;  %v148_v33 = vmul.f32 %v112_v10, %v105_v31  ;;  %s507_s27 = sld [smem:[#allocation2 + $0x1b]] }
  0x32   :  { %v168_v13 = vmul.f32 %v152_v7, %v116_v2  ;;  %v169_v14 = vmul.f32 %v155_v8, %v119_v54  ;;  %v165_v34 = vmul.f32 %v128_v55, %v116_v2  ;;  %v166_v35 = vmul.f32 %v119_v54, %v119_v54  ;;  %s517_s4 = sld [smem:[#allocation2 + $0x20]] }
  0x33   :  { %v161_v36 = vsub.f32 %v159_v21, %v160_v12  ;;  %v164_v26 = vsub.f32 %v162_v22, %v163_v23  ;;  %v149_v27 = vadd.f32 %v148_v33, %v147_v25  ;;  %v177_v30 = vmul.f32 %v152_v7, %v143_v24  ;;  %s520_s1 = sld [smem:[#allocation2 + $0x21]] }
  0x34   :  { %v170_v16 = vadd.f32 %v169_v14, %v168_v13  ;;  %v167_v29 = vsub.f32 %v165_v34, %v166_v35  ;;  %v178_v37 = vmul.f32 %v155_v8, %v146_v32  ;;  %v183_v28 = vmul.f32 %v155_v8, %v143_v24  ;;  %s522_s5 = sld [smem:[#allocation2 + $0x23]] }
  0x35   :  { %v184_v31 = vmul.f32 %v161_v36, %v146_v32  ;;  %v189_v38 = vmul.f32 %v158_v6, %v143_v24  ;;  %v190_v39 = vmul.f32 %v164_v26, %v146_v32  ;;  %v180_v40 = vmul.f32 %v158_v6, %v149_v27 }
  0x36   :  { %v172_v11 = vadd.f32 %v171_v15, %v170_v16  ;;  %v186_v41 = vmul.f32 %v164_v26, %v149_v27  ;;  %v179_v42 = vadd.f32 %v178_v37, %v177_v30  ;;  %v192_v45 = vmul.f32 %v167_v29, %v149_v27 }
  0x37   :  { %v185_v43 = vadd.f32 %v184_v31, %v183_v28  ;;  %v191_v44 = vadd.f32 %v190_v39, %v189_v38  ;;  %v195_v53 = vstv %s451_s6  ;;  %v197_v54 = vstv %s453_s7  ;;  %s524_s6 = sld [smem:[#allocation2 + $0x24]] }
  0x38   :  { %366 = vrcp.f32 %v172_v11  ;;  %v181_v49 = vadd.f32 %v180_v40, %v179_v42  ;;  %v199_v55 = vstv %s455_s8  ;;  %v205_v56 = vstv %s459_s10  ;;  %s526_s7 = sld [smem:[#allocation2 + $0x19]] }
  0x39   :  { %v187_v50 = vadd.f32 %v186_v41, %v185_v43  ;;  %v193_v51 = vadd.f32 %v192_v45, %v191_v44  ;;  %v207_v57 = vstv %s461_s11  ;;  %v213_v58 = vstv %s465_s13  ;;  %s528_s8 = sld [smem:[#allocation2 + $0x1c]] }
  0x3a   :  { %v215_v62 = vstv %s467_s14  ;;  %v202_v63 = vstv %s457_s9  ;;  %v210_v0 = vstv %s463_s12  ;;  %v218_v1 = vstv %s469_s15  ;;  %s531_s9 = sld [smem:[#allocation2 + $0x22]] }
  0x3b   :  { %v237_v17 = vstv %s471_s0  ;;  %v242_v19 = vstv %s475_s17  ;;  %v262_v22 = vstv %s483_s18  ;;  %v264_v23 = vstv %s486_s19  ;;  %s533_s10 = sld [smem:[#allocation2 + $0x25]] }
  0x3c   :  { %v267_v32 = vstv %s491_s20  ;;  %v270_v29 = vstv %s500_s23  ;;  %v221_v31 = vstv %s493_s21  ;;  %v223_v38 = vstv %s495_s22  ;;  %s539_s11 = sld [smem:[#allocation2 + $0x2b]] }
  0x3d   :  { %v229_v39 = vstv %s502_s24  ;;  %v231_v40 = vstv %s507_s27  ;;  %v246_v41 = vstv %s517_s4  ;;  %v248_v42 = vstv %s520_s1  ;;  %s355_s12 = sld [smem:[#allocation2 + $0x2c]] }
  0x3e   :  { %v254_v43 = vstv %s522_s5  ;;  %v256_v44 = vstv %s524_s6 }
  0x45   :  { %v367_v46 = vpop.eup %366 }
  0x46   :  { %v174_v47 = vmul.f32 %v367_v46, %v172_v11  ;;  %v239_v11 = vstv %s473_s16 }
  0x48   :  { %v175_v48 = vsub.f32 2.0, %v174_v47 }
  0x4a   :  { %v176_v52 = vmul.f32 %v367_v46, %v175_v48 }
  0x4c   :  { %v182_v59 = vmul.f32 %v181_v49, %v176_v52  ;;  %v188_v60 = vmul.f32 %v187_v50, %v176_v52  ;;  %v194_v61 = vmul.f32 %v193_v51, %v176_v52  ;;  %v226_v49 = vstv %s526_s7 }
  0x4d   :  { %v234_v50 = vstv %s528_s8 }
  0x4e   :  { %v196_v2 = vsub.f32 %v194_v61, %v195_v53  ;;  %v198_v3 = vmul.f32 %v197_v54, %v182_v59  ;;  %v200_v4 = vmul.f32 %v199_v55, %v188_v60  ;;  %v206_v5 = vmul.f32 %v205_v56, %v182_v59 }
  0x4f   :  { %v208_v6 = vmul.f32 %v207_v57, %v188_v60  ;;  %v214_v7 = vmul.f32 %v213_v58, %v182_v59  ;;  %v216_v8 = vmul.f32 %v215_v62, %v188_v60  ;;  %v251_v55 = vstv %s531_s9 }
  0x50   :  { %v201_v9 = vadd.f32 %v200_v4, %v198_v3  ;;  %v203_v10 = vmul.f32 %v202_v63, %v196_v2  ;;  %v211_v13 = vmul.f32 %v210_v0, %v196_v2  ;;  %v219_v14 = vmul.f32 %v218_v1, %v196_v2 }
  0x51   :  { %v209_v15 = vadd.f32 %v208_v6, %v206_v5  ;;  %v217_v16 = vadd.f32 %v216_v8, %v214_v7  ;;  %v259_v56 = vstv %s533_s10  ;;  %v273_v1 = vstv %s539_s11 }
  0x52   :  { %v204_v18 = vadd.f32 %v203_v10, %v201_v9  ;;  %v276_v5 = vstv %s355_s12 }
  0x53   :  { %v212_v20 = vadd.f32 %v211_v13, %v209_v15  ;;  %v220_v21 = vadd.f32 %v219_v14, %v217_v16 }
  0x54   :  { %v238_v12 = vmul.f32 %v237_v17, %v204_v18  ;;  %362 = vst [vmem:[%s564_s2 + $0x20] sm:$0xff] %v204_v18  ;;  %v263_v34 = vmul.f32 %v262_v22, %v204_v18  ;;  %v222_v45 = vmul.f32 %v221_v31, %v204_v18  ;;  %v230_v47 = vmul.f32 %v229_v39, %v204_v18 }
  0x55   :  { %v240_v24 = vmul.f32 %v239_v11, %v212_v20  ;;  %v243_v25 = vmul.f32 %v242_v19, %v220_v21  ;;  %363 = vst [vmem:[%s564_s2 + $0x28] sm:$0xff] %v212_v20  ;;  %364 = vst [vmem:[%s564_s2 + $0x30] sm:$0xff] %v220_v21  ;;  %v265_v35 = vmul.f32 %v264_v23, %v212_v20 }
  0x56   :  { %v268_v36 = vmul.f32 %v267_v32, %v220_v21  ;;  %v224_v46 = vmul.f32 %v223_v38, %v212_v20  ;;  %v232_v48 = vmul.f32 %v231_v40, %v212_v20  ;;  %v247_v51 = vmul.f32 %v246_v41, %v204_v18 }
  0x57   :  { %v241_v33 = vadd.f32 %v240_v24, %v238_v12  ;;  %v266_v27 = vadd.f32 %v265_v35, %v263_v34  ;;  %v249_v52 = vmul.f32 %v248_v42, %v212_v20  ;;  %v257_v54 = vmul.f32 %v256_v44, %v212_v20 }
  0x58   :  { %v225_v57 = vadd.f32 %v224_v46, %v222_v45  ;;  %v227_v58 = vmul.f32 %v226_v49, %v220_v21  ;;  %v233_v59 = vadd.f32 %v232_v48, %v230_v47  ;;  %v235_v60 = vmul.f32 %v234_v50, %v220_v21 }
  0x59   :  { %v244_v26 = vadd.f32 %v243_v25, %v241_v33  ;;  %v269_v37 = vadd.f32 %v268_v36, %v266_v27  ;;  %v250_v61 = vadd.f32 %v249_v52, %v247_v51  ;;  %v252_v62 = vmul.f32 %v251_v55, %v220_v21 }
  0x5a   :  { %v260_v0 = vmul.f32 %v259_v56, %v220_v21  ;;  %v228_v2 = vadd.f32 %v227_v58, %v225_v57  ;;  %v236_v3 = vadd.f32 %v235_v60, %v233_v59 }
  0x5b   :  { %v245_v30 = vadd.f32 %v244_v26, %v195_v53  ;;  %v271_v28 = vadd.f32 %v270_v29, %v269_v37  ;;  %v255_v53 = vmul.f32 %v254_v43, %v204_v18  ;;  %v253_v7 = vadd.f32 %v252_v62, %v250_v61 }
  0x5d   :  { %368 = vrcp.f32 %v245_v30  ;;  %v258_v63 = vadd.f32 %v257_v54, %v255_v53 }
  0x5e   :  { %370 = vrcp.f32 %v271_v28 }
  0x5f   :  { %v261_v8 = vadd.f32 %v260_v0, %v258_v63 }
  0x6a   :  { %v369_v4 = vpop.eup %368 }
  0x6b   :  { %v274_v6 = vmul.f32 %v369_v4, %v273_v1  ;;  %v371_v9 = vpop.eup %370 }
  0x6c   :  { %v277_v14 = vmul.f32 %v371_v9, %v276_v5 }
  0x6d   :  { %v278_v10 = vmul.f32 %v274_v6, %v228_v2  ;;  %v280_v13 = vmul.f32 %v274_v6, %v236_v3 }
  0x6e   :  { %v283_v15 = vmul.f32 %v277_v14, %v253_v7  ;;  %v286_v16 = vmul.f32 %v277_v14, %v261_v8 }
  0x6f   :  { %279 = vst [vmem:[%s564_s2] sm:$0xff] %v278_v10  ;;  %359 = vst [vmem:[%s564_s2 + $0x8] sm:$0xff] %v280_v13 }
  0x70   :  { %360 = vst [vmem:[%s564_s2 + $0x10] sm:$0xff] %v283_v15  ;;  %361 = vst [vmem:[%s564_s2 + $0x18] sm:$0xff] %v286_v16 }
  0x71   :  { %302 = vsyncpa [#allocation3], 1 }

</bundles_post_ra>
